<compile_context>
chip_gen: v7x
topology: tpu7x:2x2x1
jax: 0.10.0
libtpu: 0.0.40
codegen_flags: <defaults>
</compile_context>

<pallas_src>
import functools
import math

import jax
import jax.numpy as jnp
from jax.experimental import pallas as pl
from jax.experimental.pallas import tpu as pltpu


def _round_up(x, m):
    return (x + m - 1) // m * m


def _cdiv(a, b):
    return (a + b - 1) // b


# ---------------------------------------------------------------------------
# Fused multi-layer kernel (one batch tile per grid step)
# ---------------------------------------------------------------------------
def _fused_kan_kernel(x_ref, *refs, layer_metas, use_bf16_eup):
    """All KAN layers for one batch tile; activations never leave the chip.

    x_ref              : (TB, I0)          streamed per grid step
    refs[2l], refs[2l+1]: (1, K_l), (K_l, O_l[_pad])  resident params of layer l
    refs[-1]           : (TB, O_last_pad)  output tile
    """
    o_ref = refs[-1]
    param_refs = refs[:-1]

    act = x_ref[...]                                           # (TB, I0) f32
    for l, meta in enumerate(layer_metas):
        c_ref = param_refs[2 * l]                              # (1, K) scaled centers
        w_ref = param_refs[2 * l + 1]                          # (K, O) fused weights
        G = meta["grid_count"]

        # Scale hoisted onto the (TB, I) block:
        #   xt_s = (tanh(x)*zoom + pan) * (sqrt(0.5)/width)
        xt_s = jnp.tanh(act) * meta["zoom_s"] + meta["pan_s"]  # (TB, I)
        if use_bf16_eup:
            # bf16 EUP exp (~2x on the bottleneck unit on v6e/v7x; NOT for v5e).
            xt_s = xt_s.astype(jnp.bfloat16)

        # Replicate features G times along lanes: xt_rep[:, g*I+i] = xt_s[:, i]
        # (explicit lane concat; avoids reshape-lowering risk of jnp.tile)
        xt_rep = jnp.concatenate([xt_s] * G, axis=-1)          # (TB, K)
        z = xt_rep - c_ref[...]                                # centers pre-scaled
        e = jnp.exp(-(z * z))                                  # (TB, K)  EUP
        if use_bf16_eup:
            e = e.astype(jnp.bfloat16)                         # no-op if already bf16

        # One MXU matmul per layer; weights already in their storage dtype
        # (no per-step weight cast), accumulation always f32.
        act = jnp.dot(e, w_ref[...], preferred_element_type=jnp.float32)

    o_ref[...] = act.astype(o_ref.dtype)


# ---------------------------------------------------------------------------
# Parameter preparation (done once, outside the forward path)
# ---------------------------------------------------------------------------
def precompute_kernel_params(params_torch_layout, grid_range, grid_count, *,
                             use_bf16=False, out_pad_to=128):
    """(weights (O,I), coefficients (O,I,G)) per layer -> fused kernel layout."""
    lo, hi = float(grid_range[0]), float(grid_range[-1])
    zoom = (hi - lo) / 2.0
    pan = (hi + lo) / 2.0
    width = zoom / (grid_count - 1)
    s = math.sqrt(0.5) / width          # folds the -0.5 and 1/width into one scale
    centers = jnp.linspace(lo, hi, grid_count, dtype=jnp.float32)   # (G,)

    param_dtype = jnp.bfloat16 if use_bf16 else jnp.float32
    n_layers = len(params_torch_layout)

    centers_list, weff_list, metas = [], [], []
    for li, (weights, coefficients) in enumerate(params_torch_layout):
        O, I = weights.shape
        K = grid_count * I
        # centers_flat[g*I + i] = centers[g] * s
        centers_flat = jnp.repeat(centers * s, I).reshape(1, K)
        # W_eff[g*I + i, o] = coeff[o, i, g] * W[o, i]
        w_eff = (jnp.transpose(coefficients, (2, 1, 0)) *
                 jnp.transpose(weights, (1, 0))[None, :, :]).reshape(K, O)

        # Only the final layer's output dim is padded (lane-dense HBM store);
        # intermediate activations stay unpadded -> no wasted exp on pad cols.
        is_last = (li == n_layers - 1)
        O_store = _round_up(O, out_pad_to) if is_last else O
        if O_store != O:
            w_eff = jnp.pad(w_eff, ((0, 0), (0, O_store - O)))

        centers_list.append(centers_flat.astype(param_dtype))
        weff_list.append(w_eff.astype(param_dtype))
        metas.append(dict(zoom_s=zoom * s, pan_s=pan * s, grid_count=grid_count,
                          input_size=I, output_size=O, output_stored=O_store, k=K))
    return centers_list, weff_list, tuple(metas)


# ---------------------------------------------------------------------------
# Forward wrapper: one pallas_call for the whole network
# ---------------------------------------------------------------------------
def gaussian_kan_forward(x, centers_list, weff_list, metas, *,
                         batch_tile=512, use_bf16=False):
    B, I0 = x.shape
    assert I0 == metas[0]["input_size"]
    O_last = metas[-1]["output_size"]
    O_store = metas[-1]["output_stored"]
    param_bytes = 2 if use_bf16 else 4
    eup_bytes = 2 if use_bf16 else 4

    # ---- generation-aware VMEM budget ------------------------------------
    try:
        vmem_capacity = int(pltpu.get_tpu_info().vmem_capacity_bytes)
    except Exception:
        vmem_capacity = 64 << 20                     # conservative (v7x per-core)
    vmem_cap = max(32 << 20, int(0.75 * vmem_capacity))   # ~48 MiB v7x, ~96 MiB v5e/v6e

    def vmem_need(tb):
        # double-buffered streamed x / out tiles
        need = 2 * tb * I0 * 4 + 2 * tb * O_store * 4
        live_tmp = 0
        for m in metas:
            K, O = m["k"], m["output_stored"]
            need += (K + K * O) * param_bytes        # resident params (single-buffered)
            # xt_rep / z / exp temporaries + f32 matmul result for the busiest layer
            live_tmp = max(live_tmp, 3 * tb * K * eup_bytes + tb * O * 4)
        return need + live_tmp

    # ---- batch tiling: near-even tiles, >=2 steps when batch is non-trivial
    n_tiles = max(1, _cdiv(B, batch_tile))
    if n_tiles == 1 and B >= 16:
        n_tiles = 2          # lets the "parallel" axis shard across v7x's 2 TCs
    TB = _round_up(_cdiv(B, n_tiles), 8)
    while TB > 8 and vmem_need(TB) > vmem_cap:
        TB = _round_up(_cdiv(TB, 2), 8)
    B_pad = _round_up(B, TB)
    # TODO(synk): for very large K*O (wide KAN layers) that exceed the v7x VMEM
    # budget even at TB=8, add an O-tile / K-reduction grid axis instead of
    # keeping W_eff fully resident.

    vmem_limit = int(min(max(int(1.5 * vmem_need(TB)), 32 << 20), vmem_cap))

    x_p = x.astype(jnp.float32)
    if B_pad != B:
        x_p = jnp.pad(x_p, ((0, B_pad - B), (0, 0)))

    kernel = functools.partial(_fused_kan_kernel, layer_metas=metas,
                               use_bf16_eup=use_bf16)
    flat_params = [a for cw in zip(centers_list, weff_list) for a in cw]

    def build_call(single_buffer_residents):
        in_specs = [pl.BlockSpec((TB, I0), lambda b: (b, 0))]      # streamed x tile
        for c, w in zip(centers_list, weff_list):
            if single_buffer_residents:
                # constant index_map -> never re-fetched; 1 buffer is enough
                in_specs.append(pl.BlockSpec(c.shape, lambda b: (0, 0),
                                             pipeline_mode=pl.Buffered(1)))
                in_specs.append(pl.BlockSpec(w.shape, lambda b: (0, 0),
                                             pipeline_mode=pl.Buffered(1)))
            else:
                in_specs.append(pl.BlockSpec(c.shape, lambda b: (0, 0)))
                in_specs.append(pl.BlockSpec(w.shape, lambda b: (0, 0)))
        return pl.pallas_call(
            kernel,
            out_shape=jax.ShapeDtypeStruct((B_pad, O_store), jnp.float32),
            grid_spec=pltpu.PrefetchScalarGridSpec(
                num_scalar_prefetch=0,
                grid=(B_pad // TB,),
                in_specs=in_specs,
                out_specs=pl.BlockSpec((TB, O_store), lambda b: (b, 0)),
            ),
            compiler_params=pltpu.CompilerParams(
                dimension_semantics=("parallel",),
                vmem_limit_bytes=vmem_limit,
            ),
        )

    try:
        out = build_call(True)(x_p, *flat_params)
    except Exception:
        # Fallback for jax versions where pipeline_mode=pl.Buffered(1) is not
        # supported on pallas_call BlockSpecs: default double-buffering.
        out = build_call(False)(x_p, *flat_params)

    return out[:B, :O_last]


# ---------------------------------------------------------------------------
# Init (PyTorch-layout params) and pure-JAX reference
# ---------------------------------------------------------------------------
def init_gaussian_kan_params(key, layer_sizes, grid_count):
    params = []
    for li in range(1, len(layer_sizes)):
        in_size, out_size = layer_sizes[li - 1], layer_sizes[li]
        key, kw, kc = jax.random.split(key, 3)
        weights = jax.random.normal(kw, (out_size, in_size), jnp.float32)
        coefficients = 0.1 * jax.random.normal(
            kc, (out_size, in_size, grid_count), jnp.float32)
        params.append((weights, coefficients))
    return params


def _reference_forward(x, params, grid_range, grid_count):
    """Pure-JAX reference with the exact PyTorch semantics."""
    lo, hi = float(grid_range[0]), float(grid_range[-1])
    zoom = (hi - lo) / 2.0
    pan = (hi + lo) / 2.0
    width = zoom / (grid_count - 1)
    centers = jnp.linspace(lo, hi, grid_count)
    for weights, coeff in params:
        xt = jnp.tanh(x) * zoom + pan                                        # (B, I)
        exp_vals = jnp.exp(-0.5 * ((xt[:, :, None] - centers[None, None, :]) / width) ** 2)
        transformed = jnp.einsum('big,oig->boi', exp_vals, coeff)            # (B, O, I)
        x = jnp.einsum('boi,oi->bo', transformed, weights)                   # (B, O)
    return x


if __name__ == "__main__":
    layer_sizes = [4, 32, 8]
    grid_range = [-1.0, 1.0]
    grid_count = 6
    batch = 2

    key = jax.random.PRNGKey(0)
    key, kx = jax.random.split(key)
    x = jax.random.normal(kx, (batch, layer_sizes[0]), jnp.float32)

    params = init_gaussian_kan_params(key, layer_sizes, grid_count)
    centers_list, weff_list, metas = precompute_kernel_params(
        params, grid_range, grid_count, use_bf16=False)

    out = gaussian_kan_forward(x, centers_list, weff_list, metas, use_bf16=False)
    out = jax.block_until_ready(out)

    ref = _reference_forward(x, params, grid_range, grid_count)
    assert out.shape == (batch, layer_sizes[-1])
    assert jnp.allclose(out, ref, atol=1e-4, rtol=1e-4), "mismatch vs reference"

    print("KERNEL_OK")
</pallas_src>

<mosaic_0001>
module attributes {stable_mosaic.version = 11 : i64} {
  func.func @_fused_kan_kernel(%arg0: i32, %arg1: memref<8x4xf32, #tpu.memory_space<vmem>>, %arg2: memref<1x24xf32, #tpu.memory_space<vmem>>, %arg3: memref<24x32xf32, #tpu.memory_space<vmem>>, %arg4: memref<1x192xf32, #tpu.memory_space<vmem>>, %arg5: memref<192x128xf32, #tpu.memory_space<vmem>>, %arg6: memref<8x128xf32, #tpu.memory_space<vmem>>) attributes {dimension_semantics = [#tpu.dimension_semantics<parallel>], iteration_bounds = array<i64: 1>, scalar_prefetch = 0 : i64, scratch_operands = 0 : i64, tpu.core_type = #tpu.core_type<tc>, window_params = [{transform_indices = @transform_0, window_bounds = array<i64: 8, 4>}, {pipeline_mode = #tpu.pipeline_mode<synchronous>, transform_indices = @transform_1, window_bounds = array<i64: 1, 24>}, {pipeline_mode = #tpu.pipeline_mode<synchronous>, transform_indices = @transform_2, window_bounds = array<i64: 24, 32>}, {pipeline_mode = #tpu.pipeline_mode<synchronous>, transform_indices = @transform_3, window_bounds = array<i64: 1, 192>}, {pipeline_mode = #tpu.pipeline_mode<synchronous>, transform_indices = @transform_4, window_bounds = array<i64: 192, 128>}, {transform_indices = @transform_5, window_bounds = array<i64: 8, 128>}]} {
    %c0 = arith.constant 0 : index
    %c0_0 = arith.constant 0 : index
    %0 = vector.load %arg1[%c0, %c0_0] : memref<8x4xf32, #tpu.memory_space<vmem>>, vector<8x4xf32>
    %1 = math.tanh %0 : vector<8x4xf32>
    %cst = arith.constant 3.53553391 : f32
    %2 = vector.broadcast %cst : f32 to vector<8x4xf32>
    %3 = arith.mulf %1, %2 : vector<8x4xf32>
    %cst_1 = arith.constant 0.000000e+00 : f32
    %4 = vector.broadcast %cst_1 : f32 to vector<8x4xf32>
    %5 = arith.addf %3, %4 : vector<8x4xf32>
    %6 = tpu.concatenate %5, %5, %5, %5, %5, %5 in 1 : vector<8x4xf32>, vector<8x4xf32>, vector<8x4xf32>, vector<8x4xf32>, vector<8x4xf32>, vector<8x4xf32> -> vector<8x24xf32>
    %c0_2 = arith.constant 0 : index
    %c0_3 = arith.constant 0 : index
    %7 = vector.load %arg2[%c0_2, %c0_3] : memref<1x24xf32, #tpu.memory_space<vmem>>, vector<1x24xf32>
    %8 = vector.broadcast %7 : vector<1x24xf32> to vector<8x24xf32>
    %9 = arith.subf %6, %8 : vector<8x24xf32>
    %10 = arith.mulf %9, %9 : vector<8x24xf32>
    %cst_4 = arith.constant 0.000000e+00 : f32
    %11 = vector.broadcast %cst_4 : f32 to vector<8x24xf32>
    %12 = arith.subf %11, %10 : vector<8x24xf32>
    %13 = math.exp %12 : vector<8x24xf32>
    %c0_5 = arith.constant 0 : index
    %c0_6 = arith.constant 0 : index
    %14 = vector.load %arg3[%c0_5, %c0_6] : memref<24x32xf32, #tpu.memory_space<vmem>>, vector<24x32xf32>
    %cst_7 = arith.constant dense<0.000000e+00> : vector<8x32xf32>
    %15 = tpu.matmul %13, %14, %cst_7 {dimension_numbers = #tpu.dot_dimension_numbers<[1], [0], [0], [1], [0, 0, 1, 1], [], []>} : vector<8x24xf32>, vector<24x32xf32>, vector<8x32xf32> -> vector<8x32xf32>
    %16 = math.tanh %15 : vector<8x32xf32>
    %cst_8 = arith.constant 3.53553391 : f32
    %17 = vector.broadcast %cst_8 : f32 to vector<8x32xf32>
    %18 = arith.mulf %16, %17 : vector<8x32xf32>
    %cst_9 = arith.constant 0.000000e+00 : f32
    %19 = vector.broadcast %cst_9 : f32 to vector<8x32xf32>
    %20 = arith.addf %18, %19 : vector<8x32xf32>
    %21 = tpu.concatenate %20, %20, %20, %20, %20, %20 in 1 : vector<8x32xf32>, vector<8x32xf32>, vector<8x32xf32>, vector<8x32xf32>, vector<8x32xf32>, vector<8x32xf32> -> vector<8x192xf32>
    %c0_10 = arith.constant 0 : index
    %c0_11 = arith.constant 0 : index
    %22 = vector.load %arg4[%c0_10, %c0_11] : memref<1x192xf32, #tpu.memory_space<vmem>>, vector<1x192xf32>
    %23 = vector.broadcast %22 : vector<1x192xf32> to vector<8x192xf32>
    %24 = arith.subf %21, %23 : vector<8x192xf32>
    %25 = arith.mulf %24, %24 : vector<8x192xf32>
    %cst_12 = arith.constant 0.000000e+00 : f32
    %26 = vector.broadcast %cst_12 : f32 to vector<8x192xf32>
    %27 = arith.subf %26, %25 : vector<8x192xf32>
    %28 = math.exp %27 : vector<8x192xf32>
    %c0_13 = arith.constant 0 : index
    %c0_14 = arith.constant 0 : index
    %29 = vector.load %arg5[%c0_13, %c0_14] : memref<192x128xf32, #tpu.memory_space<vmem>>, vector<192x128xf32>
    %cst_15 = arith.constant dense<0.000000e+00> : vector<8x128xf32>
    %30 = tpu.matmul %28, %29, %cst_15 {dimension_numbers = #tpu.dot_dimension_numbers<[1], [0], [0], [1], [0, 0, 1, 1], [], []>} : vector<8x192xf32>, vector<192x128xf32>, vector<8x128xf32> -> vector<8x128xf32>
    %c0_16 = arith.constant 0 : index
    %c0_17 = arith.constant 0 : index
    %31 = vector.load %arg6[%c0_16, %c0_17] : memref<8x128xf32, #tpu.memory_space<vmem>>, vector<8x128xf32>
    tpu.vector_store %arg6[%c0_16, %c0_17], %30 {strides = array<i32>} : memref<8x128xf32, #tpu.memory_space<vmem>>, vector<8x128xf32>,
    return
  }
  func.func @transform_0(%arg0: i32) -> (i32, i32) {
    %c0_i32 = arith.constant 0 : i32
    %c0_i32_0 = arith.constant 0 : i32
    return %arg0, %c0_i32 : i32, i32
  }
  func.func @transform_1(%arg0: i32) -> (i32, i32) {
    %c0_i32 = arith.constant 0 : i32
    %c0_i32_0 = arith.constant 0 : i32
    %c0_i32_1 = arith.constant 0 : i32
    return %c0_i32, %c0_i32_0 : i32, i32
  }
  func.func @transform_2(%arg0: i32) -> (i32, i32) {
    %c0_i32 = arith.constant 0 : i32
    %c0_i32_0 = arith.constant 0 : i32
    %c0_i32_1 = arith.constant 0 : i32
    return %c0_i32, %c0_i32_0 : i32, i32
  }
  func.func @transform_3(%arg0: i32) -> (i32, i32) {
    %c0_i32 = arith.constant 0 : i32
    %c0_i32_0 = arith.constant 0 : i32
    %c0_i32_1 = arith.constant 0 : i32
    return %c0_i32, %c0_i32_0 : i32, i32
  }
  func.func @transform_4(%arg0: i32) -> (i32, i32) {
    %c0_i32 = arith.constant 0 : i32
    %c0_i32_0 = arith.constant 0 : i32
    %c0_i32_1 = arith.constant 0 : i32
    return %c0_i32, %c0_i32_0 : i32, i32
  }
  func.func @transform_5(%arg0: i32) -> (i32, i32) {
    %c0_i32 = arith.constant 0 : i32
    %c0_i32_0 = arith.constant 0 : i32
    return %arg0, %c0_i32 : i32, i32
  }
}

module attributes {stable_mosaic.version = 11 : i64} {
  func.func @_fused_kan_kernel(%arg0: i32, %arg1: memref<8x4xf32, #tpu.memory_space<vmem>>, %arg2: memref<1x24xf32, #tpu.memory_space<vmem>>, %arg3: memref<24x32xf32, #tpu.memory_space<vmem>>, %arg4: memref<1x192xf32, #tpu.memory_space<vmem>>, %arg5: memref<192x128xf32, #tpu.memory_space<vmem>>, %arg6: memref<8x128xf32, #tpu.memory_space<vmem>>) attributes {dimension_semantics = [#tpu.dimension_semantics<parallel>], iteration_bounds = array<i64: 1>, scalar_prefetch = 0 : i64, scratch_operands = 0 : i64, tpu.core_type = #tpu.core_type<tc>, window_params = [{transform_indices = @transform_0, window_bounds = array<i64: 8, 4>}, {pipeline_mode = #tpu.pipeline_mode<synchronous>, transform_indices = @transform_1, window_bounds = array<i64: 1, 24>}, {pipeline_mode = #tpu.pipeline_mode<synchronous>, transform_indices = @transform_2, window_bounds = array<i64: 24, 32>}, {pipeline_mode = #tpu.pipeline_mode<synchronous>, transform_indices = @transform_3, window_bounds = array<i64: 1, 192>}, {pipeline_mode = #tpu.pipeline_mode<synchronous>, transform_indices = @transform_4, window_bounds = array<i64: 192, 128>}, {transform_indices = @transform_5, window_bounds = array<i64: 8, 128>}]} {
    %c0 = arith.constant 0 : index
    %c0_0 = arith.constant 0 : index
    %0 = vector.load %arg1[%c0, %c0_0] : memref<8x4xf32, #tpu.memory_space<vmem>>, vector<8x4xf32>
    %1 = math.tanh %0 : vector<8x4xf32>
    %cst = arith.constant 3.53553391 : f32
    %2 = vector.broadcast %cst : f32 to vector<8x4xf32>
    %3 = arith.mulf %1, %2 : vector<8x4xf32>
    %cst_1 = arith.constant 0.000000e+00 : f32
    %4 = vector.broadcast %cst_1 : f32 to vector<8x4xf32>
    %5 = arith.addf %3, %4 : vector<8x4xf32>
    %6 = tpu.concatenate %5, %5, %5, %5, %5, %5 in 1 : vector<8x4xf32>, vector<8x4xf32>, vector<8x4xf32>, vector<8x4xf32>, vector<8x4xf32>, vector<8x4xf32> -> vector<8x24xf32>
    %c0_2 = arith.constant 0 : index
    %c0_3 = arith.constant 0 : index
    %7 = vector.load %arg2[%c0_2, %c0_3] : memref<1x24xf32, #tpu.memory_space<vmem>>, vector<1x24xf32>
    %8 = vector.broadcast %7 : vector<1x24xf32> to vector<8x24xf32>
    %9 = arith.subf %6, %8 : vector<8x24xf32>
    %10 = arith.mulf %9, %9 : vector<8x24xf32>
    %cst_4 = arith.constant 0.000000e+00 : f32
    %11 = vector.broadcast %cst_4 : f32 to vector<8x24xf32>
    %12 = arith.subf %11, %10 : vector<8x24xf32>
    %13 = math.exp %12 : vector<8x24xf32>
    %c0_5 = arith.constant 0 : index
    %c0_6 = arith.constant 0 : index
    %14 = vector.load %arg3[%c0_5, %c0_6] : memref<24x32xf32, #tpu.memory_space<vmem>>, vector<24x32xf32>
    %cst_7 = arith.constant dense<0.000000e+00> : vector<8x32xf32>
    %15 = tpu.matmul %13, %14, %cst_7 {dimension_numbers = #tpu.dot_dimension_numbers<[1], [0], [0], [1], [0, 0, 1, 1], [], []>} : vector<8x24xf32>, vector<24x32xf32>, vector<8x32xf32> -> vector<8x32xf32>
    %16 = math.tanh %15 : vector<8x32xf32>
    %cst_8 = arith.constant 3.53553391 : f32
    %17 = vector.broadcast %cst_8 : f32 to vector<8x32xf32>
    %18 = arith.mulf %16, %17 : vector<8x32xf32>
    %cst_9 = arith.constant 0.000000e+00 : f32
    %19 = vector.broadcast %cst_9 : f32 to vector<8x32xf32>
    %20 = arith.addf %18, %19 : vector<8x32xf32>
    %21 = tpu.concatenate %20, %20, %20, %20, %20, %20 in 1 : vector<8x32xf32>, vector<8x32xf32>, vector<8x32xf32>, vector<8x32xf32>, vector<8x32xf32>, vector<8x32xf32> -> vector<8x192xf32>
    %c0_10 = arith.constant 0 : index
    %c0_11 = arith.constant 0 : index
    %22 = vector.load %arg4[%c0_10, %c0_11] : memref<1x192xf32, #tpu.memory_space<vmem>>, vector<1x192xf32>
    %23 = vector.broadcast %22 : vector<1x192xf32> to vector<8x192xf32>
    %24 = arith.subf %21, %23 : vector<8x192xf32>
    %25 = arith.mulf %24, %24 : vector<8x192xf32>
    %cst_12 = arith.constant 0.000000e+00 : f32
    %26 = vector.broadcast %cst_12 : f32 to vector<8x192xf32>
    %27 = arith.subf %26, %25 : vector<8x192xf32>
    %28 = math.exp %27 : vector<8x192xf32>
    %c0_13 = arith.constant 0 : index
    %c0_14 = arith.constant 0 : index
    %29 = vector.load %arg5[%c0_13, %c0_14] : memref<192x128xf32, #tpu.memory_space<vmem>>, vector<192x128xf32>
    %cst_15 = arith.constant dense<0.000000e+00> : vector<8x128xf32>
    %30 = tpu.matmul %28, %29, %cst_15 {dimension_numbers = #tpu.dot_dimension_numbers<[1], [0], [0], [1], [0, 0, 1, 1], [], []>} : vector<8x192xf32>, vector<192x128xf32>, vector<8x128xf32> -> vector<8x128xf32>
    %c0_16 = arith.constant 0 : index
    %c0_17 = arith.constant 0 : index
    %31 = vector.load %arg6[%c0_16, %c0_17] : memref<8x128xf32, #tpu.memory_space<vmem>>, vector<8x128xf32>
    tpu.vector_store %arg6[%c0_16, %c0_17], %30 {strides = array<i32>} : memref<8x128xf32, #tpu.memory_space<vmem>>, vector<8x128xf32>,
    return
  }
  func.func @transform_0(%arg0: i32) -> (i32, i32) {
    %c0_i32 = arith.constant 0 : i32
    %c0_i32_0 = arith.constant 0 : i32
    return %arg0, %c0_i32 : i32, i32
  }
  func.func @transform_1(%arg0: i32) -> (i32, i32) {
    %c0_i32 = arith.constant 0 : i32
    %c0_i32_0 = arith.constant 0 : i32
    %c0_i32_1 = arith.constant 0 : i32
    return %c0_i32, %c0_i32_0 : i32, i32
  }
  func.func @transform_2(%arg0: i32) -> (i32, i32) {
    %c0_i32 = arith.constant 0 : i32
    %c0_i32_0 = arith.constant 0 : i32
    %c0_i32_1 = arith.constant 0 : i32
    return %c0_i32, %c0_i32_0 : i32, i32
  }
  func.func @transform_3(%arg0: i32) -> (i32, i32) {
    %c0_i32 = arith.constant 0 : i32
    %c0_i32_0 = arith.constant 0 : i32
    %c0_i32_1 = arith.constant 0 : i32
    return %c0_i32, %c0_i32_0 : i32, i32
  }
  func.func @transform_4(%arg0: i32) -> (i32, i32) {
    %c0_i32 = arith.constant 0 : i32
    %c0_i32_0 = arith.constant 0 : i32
    %c0_i32_1 = arith.constant 0 : i32
    return %c0_i32, %c0_i32_0 : i32, i32
  }
  func.func @transform_5(%arg0: i32) -> (i32, i32) {
    %c0_i32 = arith.constant 0 : i32
    %c0_i32_0 = arith.constant 0 : i32
    return %arg0, %c0_i32 : i32, i32
  }
}

</mosaic_0001>

<bundles_post_ra>
// kernel: tpu_custom_call.1
= control target key start
LH: loop header
LB: loop body
LE: loop exit
PB: predicated region body
PF: predicated region fallthrough
CT: control target
= control target key end

     0   :  { %10 = vsyncpa [#allocation3], 0  ;;  %s583_s0 = inlined_call_operand.vmem [shape: f32[8,4], index: 0, kind: input, shape index: {}]   ;;  %s584_s1 = inlined_call_operand.vmem [shape: f32[1,24], index: 1, kind: input, shape index: {}]   ;;  %s585_s2 = inlined_call_operand.hbm [shape: f32[24,32], index: 2, kind: input, shape index: {}]   ;;  %s586_s3 = inlined_call_operand.vmem [shape: f32[1,192], index: 3, kind: input, shape index: {}]   ;;  %s587_s4 = inlined_call_operand.hbm [shape: f32[192,128], index: 4, kind: input, shape index: {}]   ;;  %s588_s5 = inlined_call_operand.hbm [shape: f32[8,128], index: 5, kind: output, shape index: {}]  }
   0x1   :  { %11 = vsyncpa [#allocation6], 0 }
   0x2   :  { %12 = vsyncpa [#allocation4], 0  ;;  %s475_s18 = smov [#allocation2]   ;;  %s403_s22 = scalar_lea.hbm %s585_s2, 384 }
   0x3   :  { %s22_s19 = sshll.u32 %s475_s18, 4  ;;  %p404_p0 = scmp.ne.s32.totalorder %s585_s2, %s403_s22  ;;  %s23_s19 = int_to_ptr.vmem [resolvable:$true] %s22_s19 }
   0x4   :  { %p407_p1 = scmp.lt.u32.totalorder %s403_s22, %s585_s2 }
   0x6   :  { %p409_p2 = pnand %p407_p1, %p404_p0 }
   0x8   :  { %412 = shalt.err (!%p409_p2)
}
   0x9   :  { %s413_s27 = scalar_lea.vmem %s23_s19, 384  ;;  %p418_p4 = scmp.lt.s32.totalorder %s23_s19, %s23_s19 }
   0xa   :  { %p414_p3 = scmp.ne.s32.totalorder %s23_s19, %s413_s27  ;;  %p419_p5 = scmp.lt.s32.totalorder %s413_s27, %s413_s27 }
   0xc   :  { %p420_p6 = por %p419_p5, %p418_p4 }
   0xe   :  { %p421_p7 = pnand %p420_p6, %p414_p3 }
  0x10   :  { %424 = shalt.err (!%p421_p7)
}
  0x11   :  { %s476_s28 = smov 128   ;;  %s477_s29 = smov 8  }
  0x12   :  { %28 = dma.hbm_to_vmem [thread:$0]  %s585_s2, 384, %s23_s19, [#allocation3], %s476_s28, %s476_s28, %s477_s29  }
  0x13   :  { %s478_s7 = smov [#allocation5]   ;;  %s425_s11 = scalar_lea.hbm %s587_s4, 3072 }
  0x14   :  { %s36_s8 = sshll.u32 %s478_s7, 4  ;;  %p426_p8 = scmp.ne.s32.totalorder %s587_s4, %s425_s11  ;;  %s37_s8 = int_to_ptr.vmem [resolvable:$true] %s36_s8 }
  0x15   :  { %p429_p9 = scmp.lt.u32.totalorder %s425_s11, %s587_s4 }
  0x17   :  { %p431_p10 = pnand %p429_p9, %p426_p8 }
  0x19   :  { %434 = shalt.err (!%p431_p10)
}
  0x1a   :  { %s435_s16 = scalar_lea.vmem %s37_s8, 3072  ;;  %p440_p12 = scmp.lt.s32.totalorder %s37_s8, %s37_s8 }
  0x1b   :  { %p436_p11 = scmp.ne.s32.totalorder %s37_s8, %s435_s16  ;;  %p441_p13 = scmp.lt.s32.totalorder %s435_s16, %s435_s16 }
  0x1d   :  { %p442_p0 = por %p441_p13, %p440_p12 }
  0x1f   :  { %p443_p1 = pnand %p442_p0, %p436_p11 }
  0x21   :  { %446 = shalt.err (!%p443_p1)
}
  0x22   :  { %42 = dma.hbm_to_vmem [thread:$0]  %s587_s4, 3072, %s37_s8, [#allocation6], %s476_s28, %s476_s28, %s477_s29  }
  0x23   :  { %469 = dma.done.wait [#allocation3], 384  }
  0x24   :  { %470 = vsyncadd [#allocation3], 4294966912 }
  0x25   :  { %471 = dma.done.wait [#allocation6], 3072  }
  0x26   :  { %472 = vsyncadd [#allocation6], 4294964224  ;;  %v49_v0 = vld [vmem:[%s583_s0] sm:$0xff]  ;;  %s479_s20 = smov 4   ;;  %s480_s21 = smov 12   ;;  %v92_v4 = vld [vmem:[#allocation2 + $0x8] sm:$0xff] }
  0x27   :  { %393 = vtanh.f32 %v49_v0  ;;  %s481_s22 = smov 16   ;;  %v91_v3 = vld [vmem:[#allocation2] sm:$0xff]  ;;  %v482_v5 = vmov 0.0|0.0   ;;  %vm483_vm0 = vmmov 0   ;;  %v484_v7 = vmov 0.0   ;;  %s485_s0 = smov 20  }
  0x28   :  { %339 = vmatprep.subr.bf16.mxu0 %v482_v5  ;;  %v340_v6 = vpack.c.bf16 %v92_v4, %v91_v3  ;;  %336 = vmatprep.mubr.msk.f32.mxu0 %vm483_vm0, %v484_v7  ;;  %v93_v8 = vld [vmem:[#allocation2 + $0x10] sm:$0xff]  ;;  %vm69_vm1 = vcmask 31744   ;;  %vm71_vm2 = vcmask 64512   ;;  %vm73_vm3 = vcmask 97280   ;;  %v323_v17 = vld [vmem:[%s584_s1] ss:$0 sm:$0xff] }
  0x29   :  { %342 = vmatprep.subr.bf16.mxu1 %v482_v5  ;;  %vm75_vm4 = vcmask 130048   ;;  %vm77_vm5 = vcmask 162816   ;;  %vm94_vm6 = vcmask 195584   ;;  %v209_v25 = vld [vmem:[#allocation5] sm:$0xff]  ;;  %v210_v26 = vld [vmem:[#allocation5 + $0x8] sm:$0xff]  ;;  %v211_v27 = vld [vmem:[#allocation5 + $0x10] sm:$0xff] }
  0x2a   :  { %341 = vmatpush3.bf16.msra.mxu0 %v340_v6  ;;  %v343_v28 = vpack.c.bf16 %v210_v26, %v209_v25  ;;  %v212_v29 = vld [vmem:[#allocation5 + $0x18] sm:$0xff]  ;;  %v213_v31 = vld [vmem:[#allocation5 + $0x20] sm:$0xff]  ;;  %v214_v32 = vld [vmem:[#allocation5 + $0x28] sm:$0xff]  ;;  %s486_s1 = smov 64   ;;  %s487_s24 = smov 32   ;;  %vm181_vm7 = vcmask 261120  }
  0x2b   :  { %334 = vmatprep.subr.mxu0 %v484_v7  ;;  %v346_v30 = vpack.c.bf16 %v212_v29, %v211_v27  ;;  %v349_v33 = vpack.c.bf16 %v214_v32, %v213_v31  ;;  %v215_v34 = vld [vmem:[#allocation5 + $0x30] sm:$0xff]  ;;  %v216_v35 = vld [vmem:[#allocation5 + $0x38] sm:$0xff]  ;;  %v217_v37 = vld [vmem:[#allocation5 + $0x40] sm:$0xff]  ;;  %s488_s25 = smov 96   ;;  %vm183_vm8 = vcmask 523264   ;;  %vm185_vm9 = vcmask 785408  }
  0x2c   :  { %344 = vmatpush1.bf16.msra.mxu1 %v343_v28  ;;  %v352_v36 = vpack.c.bf16 %v216_v35, %v215_v34  ;;  %v218_v38 = vld [vmem:[#allocation5 + $0x48] sm:$0xff]  ;;  %v219_v40 = vld [vmem:[#allocation5 + $0x50] sm:$0xff]  ;;  %v220_v41 = vld [vmem:[#allocation5 + $0x58] sm:$0xff] }
  0x2d   :  { %345 = vmatprep.subr.bf16.mxu1 %v482_v5  ;;  %v355_v39 = vpack.c.bf16 %v218_v38, %v217_v37  ;;  %v358_v42 = vpack.c.bf16 %v220_v41, %v219_v40  ;;  %v221_v43 = vld [vmem:[#allocation5 + $0x60] sm:$0xff]  ;;  %v222_v44 = vld [vmem:[#allocation5 + $0x68] sm:$0xff]  ;;  %v223_v48 = vld [vmem:[#allocation5 + $0x70] sm:$0xff] }
  0x2e   :  { %335 = vmatpush3.msra.mxu0 %v93_v8  ;;  %v361_v46 = vpack.c.bf16 %v222_v44, %v221_v43  ;;  %v224_v49 = vld [vmem:[#allocation5 + $0x78] sm:$0xff]  ;;  %v225_v51 = vld [vmem:[#allocation5 + $0x80] sm:$0xff]  ;;  %v226_v52 = vld [vmem:[#allocation5 + $0x88] sm:$0xff] }
  0x2f   :  { %v364_v50 = vpack.c.bf16 %v224_v49, %v223_v48  ;;  %v367_v53 = vpack.c.bf16 %v226_v52, %v225_v51  ;;  %v227_v54 = vld [vmem:[#allocation5 + $0x90] sm:$0xff]  ;;  %v228_v55 = vld [vmem:[#allocation5 + $0x98] sm:$0xff]  ;;  %v229_v59 = vld [vmem:[#allocation5 + $0xa0] sm:$0xff] }
  0x30   :  { %347 = vmatpush1.bf16.msra.mxu1 %v346_v30  ;;  %v370_v57 = vpack.c.bf16 %v228_v55, %v227_v54  ;;  %v230_v60 = vld [vmem:[#allocation5 + $0xa8] sm:$0xff]  ;;  %v231_v62 = vld [vmem:[#allocation5 + $0xb0] sm:$0xff]  ;;  %v232_v63 = vld [vmem:[#allocation5 + $0xb8] sm:$0xff] }
  0x31   :  { %v394_v1 = vpop.eup %393  ;;  %348 = vmatprep.subr.bf16.mxu1 %v482_v5  ;;  %v373_v61 = vpack.c.bf16 %v230_v60, %v229_v59  ;;  %v376_v0 = vpack.c.bf16 %v232_v63, %v231_v62  ;;  %v187_v4 = vld [vmem:[%s586_s3] sm:$0x3]  ;;  %s489_s3 = smov [#allocation7]  }
  0x32   :  { %v51_v2 = vmul.f32 3.535534, %v394_v1  ;;  %v189_v1 = vlaneseq  ;;  %s313_s28 = sshll.u32 %s489_s3, 4  ;;  %s314_s28 = int_to_ptr.vmem [resolvable:$true] %s313_s28 }
  0x33   :  { %p452_p3 = scmp.lt.s32.totalorder %s314_s28, %s314_s28 }
  0x34   :  { %54 = vrot.lane.b32.xlu0 %v51_v2, %s479_s20  ;;  %60 = vrot.lane.b32.xlu1 %v51_v2, %s480_s21 }
  0x35   :  { %350 = vmatpush1.bf16.msra.mxu1 %v349_v33 }
  0x36   :  { %351 = vmatprep.subr.bf16.mxu1 %v482_v5 }
  0x38   :  { %57 = vrot.lane.b32.xlu0 %v51_v2, %s477_s29  ;;  %63 = vrot.lane.b32.xlu1 %v51_v2, %s481_s22  ;;  %s447_s29 = scalar_lea.vmem %s314_s28, 128 }
  0x39   :  { %353 = vmatpush1.bf16.msra.mxu1 %v352_v36  ;;  %p448_p2 = scmp.ne.s32.totalorder %s314_s28, %s447_s29  ;;  %p453_p4 = scmp.lt.s32.totalorder %s447_s29, %s447_s29 }
  0x3a   :  { %354 = vmatprep.subr.bf16.mxu1 %v482_v5 }
  0x3b   :  { %p454_p5 = por %p453_p4, %p452_p3 }
  0x3c   :  { %66 = vrot.lane.b32.xlu0 %v51_v2, %s485_s0 }
  0x3d   :  { %356 = vmatpush1.bf16.msra.mxu1 %v355_v39  ;;  %p455_p6 = pnand %p454_p5, %p448_p2 }
  0x3e   :  { %357 = vmatprep.subr.bf16.mxu1 %v482_v5 }
  0x41   :  { %359 = vmatpush1.bf16.msra.mxu1 %v358_v42 }
  0x42   :  { %360 = vmatprep.subr.bf16.mxu1 %v482_v5 }
  0x45   :  { %362 = vmatpush1.bf16.msra.mxu1 %v361_v46 }
  0x46   :  { %363 = vmatprep.subr.bf16.mxu1 %v482_v5 }
  0x49   :  { %365 = vmatpush1.bf16.msra.mxu1 %v364_v50 }
  0x4a   :  { %366 = vmatprep.subr.bf16.mxu1 %v482_v5 }
  0x4d   :  { %368 = vmatpush1.bf16.msra.mxu1 %v367_v53 }
  0x4e   :  { %369 = vmatprep.subr.bf16.mxu1 %v482_v5 }
  0x51   :  { %371 = vmatpush1.bf16.msra.mxu1 %v370_v57 }
  0x52   :  { %372 = vmatprep.subr.bf16.mxu1 %v482_v5 }
  0x55   :  { %374 = vmatpush1.bf16.msra.mxu1 %v373_v61 }
  0x56   :  { %375 = vmatprep.subr.bf16.mxu1 %v482_v5 }
  0x59   :  { %377 = vmatpush1.bf16.msra.mxu1 %v376_v0 }
  0xa6   :  { %v55_v9 = vpop.permute.xlu0 %54  ;;  %v61_v10 = vpop.permute.xlu1 %60 }
  0xa7   :  { %v70_v11 = vsel %vm69_vm1, %v51_v2, %v55_v9  ;;  %v190_v2 = vshrl.u32 %v189_v1, 7 }
  0xa9   :  { %v195_v3 = vsub.s32 1, %v190_v2  ;;  %v191_v6 = vsub.s32 0, %v190_v2 }
  0xaa   :  { %v58_v12 = vpop.permute.xlu0 %57  ;;  %v64_v13 = vpop.permute.xlu1 %63 }
  0xab   :  { %v72_v14 = vsel %vm71_vm2, %v70_v11, %v58_v12  ;;  %v196_v7 = vrot.slane %v187_v4, %v195_v3  ;;  %v192_v11 = vrot.slane %v187_v4, %v191_v6 }
  0xac   :  { %v74_v15 = vsel %vm73_vm3, %v72_v14, %v61_v10 }
  0xad   :  { %v76_v16 = vsel %vm75_vm4, %v74_v15, %v64_v13 }
  0xae   :  { %v67_v18 = vpop.permute.xlu0 %66 }
  0xaf   :  { %v78_v19 = vsel %vm77_vm5, %v76_v16, %v67_v18 }
  0xb0   :  { %v86_v20 = vsub.f32 %v78_v19, %v323_v17 }
  0xb2   :  { %v87_v21 = vmul.f32 %v86_v20, %v86_v20 }
  0xb4   :  { %v88_v22 = vsub.f32 0.0, %v87_v21 }
  0xb6   :  { %v89_v23 = vmul.f32 1.442695, %v88_v22 }
  0xb8   :  { %395 = vpow2.f32 %v89_v23 }
  0xc2   :  { %v396_v24 = vpop.eup %395 }
  0xc3   :  { %337 = vmatmul.mubr.msk.f32.vlgmr.msra.gmra.mrb[0].mxu0 %vm94_vm6, %v396_v24 }
 0x196   :  { %v164_v45 = vpop.f32.mrb[0].mxu0 }
 0x197   :  { %397 = vtanh.f32 %v164_v45  ;;  %v338_v47 = vpop.f32.mrb[1].mxu0 }
 0x1a1   :  { %v398_v56 = vpop.eup %397 }
 0x1a2   :  { %v169_v58 = vmul.f32 3.535534, %v398_v56 }
 0x1a4   :  { %175 = vrot.lane.b32.xlu0 %v169_v58, %s486_s1  ;;  %172 = vrot.lane.b32.xlu1 %v169_v58, %s487_s24 }
 0x1a8   :  { %178 = vrot.lane.b32.xlu1 %v169_v58, %s488_s25 }
 0x216   :  { %v173_v8 = vpop.permute.xlu1 %172  ;;  %v176_v9 = vpop.permute.xlu0 %175 }
 0x217   :  { %v182_v10 = vsel %vm181_vm7, %v169_v58, %v173_v8 }
 0x218   :  { %v200_v12 = vsub.f32 %v182_v10, %v196_v7  ;;  %v184_v14 = vsel %vm183_vm8, %v182_v10, %v176_v9 }
 0x21a   :  { %v202_v5 = vmul.f32 %v200_v12, %v200_v12  ;;  %v179_v13 = vpop.permute.xlu1 %178 }
 0x21b   :  { %v186_v15 = vsel %vm185_vm9, %v184_v14, %v179_v13 }
 0x21c   :  { %v204_v16 = vsub.f32 0.0, %v202_v5  ;;  %v199_v17 = vsub.f32 %v186_v15, %v192_v11 }
 0x21e   :  { %v207_v18 = vmul.f32 1.442695, %v204_v16  ;;  %v201_v19 = vmul.f32 %v199_v17, %v199_v17 }
 0x220   :  { %399 = vpow2.f32 %v207_v18  ;;  %v203_v20 = vsub.f32 0.0, %v201_v19 }
 0x222   :  { %v205_v21 = vmul.f32 1.442695, %v203_v20 }
 0x224   :  { %401 = vpow2.f32 %v205_v21 }
 0x22a   :  { %v400_v22 = vpop.eup %399 }
 0x22b   :  { %325 = vmatprep.mubr.msk.f32.mxu1 %vm183_vm8, %v400_v22 }
 0x22e   :  { %v402_v23 = vpop.eup %401 }
 0x22f   :  { %301 = vmatmul.mubr.f32.vlgmr.msra.gmra.mrb[0].mxu1 %v402_v23 }
 0x302   :  { %v302_v24 = vpop.f32.mrb[0].mxu1 }
 0x303   :  { %306 = vst [vmem:[#allocation7] sm:$0xff] %v302_v24  ;;  %v304_v25 = vpop.f32.mrb[1].mxu1 }
 0x304   :  { %458 = shalt.err (!%p455_p6)
}
 0x305   :  { %s459_s7 = scalar_lea.hbm %s588_s5, 128 }
 0x306   :  { %p460_p7 = scmp.ne.s32.totalorder %s588_s5, %s459_s7  ;;  %p463_p8 = scmp.lt.u32.totalorder %s459_s7, %s588_s5 }
 0x308   :  { %p465_p9 = pnand %p463_p8, %p460_p7 }
 0x30a   :  { %468 = shalt.err (!%p465_p9)
}
 0x30b   :  { %316 = dma.vmem_to_hbm [thread:$0]  %s314_s28, 128, %s588_s5, [#allocation4]  }
 0x30c   :  { %473 = dma.done.wait [#allocation4], 128  }
 0x30d   :  { %474 = vsyncadd [#allocation4], 4294967168 }
 0x30e   :  { %320 = vsyncpa [#allocation3], 1 }
 0x30f   :  { %321 = vsyncpa [#allocation6], 1 }
 0x310   :  { %322 = vsyncpa [#allocation4], 1 }

// kernel: tpu_custom_call.1
= control target key start
LH: loop header
LB: loop body
LE: loop exit
PB: predicated region body
PF: predicated region fallthrough
CT: control target
= control target key end

     0   :  { %10 = vsyncpa [#allocation3], 0  ;;  %s583_s0 = inlined_call_operand.vmem [shape: f32[8,4], index: 0, kind: input, shape index: {}]   ;;  %s584_s1 = inlined_call_operand.vmem [shape: f32[1,24], index: 1, kind: input, shape index: {}]   ;;  %s585_s2 = inlined_call_operand.hbm [shape: f32[24,32], index: 2, kind: input, shape index: {}]   ;;  %s586_s3 = inlined_call_operand.vmem [shape: f32[1,192], index: 3, kind: input, shape index: {}]   ;;  %s587_s4 = inlined_call_operand.hbm [shape: f32[192,128], index: 4, kind: input, shape index: {}]   ;;  %s588_s5 = inlined_call_operand.hbm [shape: f32[8,128], index: 5, kind: output, shape index: {}]  }
   0x1   :  { %11 = vsyncpa [#allocation6], 0 }
   0x2   :  { %12 = vsyncpa [#allocation4], 0  ;;  %s475_s18 = smov [#allocation2]   ;;  %s403_s22 = scalar_lea.hbm %s585_s2, 384 }
   0x3   :  { %s22_s19 = sshll.u32 %s475_s18, 4  ;;  %p404_p0 = scmp.ne.s32.totalorder %s585_s2, %s403_s22  ;;  %s23_s19 = int_to_ptr.vmem [resolvable:$true] %s22_s19 }
   0x4   :  { %p407_p1 = scmp.lt.u32.totalorder %s403_s22, %s585_s2 }
   0x6   :  { %p409_p2 = pnand %p407_p1, %p404_p0 }
   0x8   :  { %412 = shalt.err (!%p409_p2)
}
   0x9   :  { %s413_s27 = scalar_lea.vmem %s23_s19, 384  ;;  %p418_p4 = scmp.lt.s32.totalorder %s23_s19, %s23_s19 }
   0xa   :  { %p414_p3 = scmp.ne.s32.totalorder %s23_s19, %s413_s27  ;;  %p419_p5 = scmp.lt.s32.totalorder %s413_s27, %s413_s27 }
   0xc   :  { %p420_p6 = por %p419_p5, %p418_p4 }
   0xe   :  { %p421_p7 = pnand %p420_p6, %p414_p3 }
  0x10   :  { %424 = shalt.err (!%p421_p7)
}
  0x11   :  { %s476_s28 = smov 128   ;;  %s477_s29 = smov 8  }
  0x12   :  { %28 = dma.hbm_to_vmem [thread:$0]  %s585_s2, 384, %s23_s19, [#allocation3], %s476_s28, %s476_s28, %s477_s29  }
  0x13   :  { %s478_s7 = smov [#allocation5]   ;;  %s425_s11 = scalar_lea.hbm %s587_s4, 3072 }
  0x14   :  { %s36_s8 = sshll.u32 %s478_s7, 4  ;;  %p426_p8 = scmp.ne.s32.totalorder %s587_s4, %s425_s11  ;;  %s37_s8 = int_to_ptr.vmem [resolvable:$true] %s36_s8 }
  0x15   :  { %p429_p9 = scmp.lt.u32.totalorder %s425_s11, %s587_s4 }
  0x17   :  { %p431_p10 = pnand %p429_p9, %p426_p8 }
  0x19   :  { %434 = shalt.err (!%p431_p10)
}
  0x1a   :  { %s435_s16 = scalar_lea.vmem %s37_s8, 3072  ;;  %p440_p12 = scmp.lt.s32.totalorder %s37_s8, %s37_s8 }
  0x1b   :  { %p436_p11 = scmp.ne.s32.totalorder %s37_s8, %s435_s16  ;;  %p441_p13 = scmp.lt.s32.totalorder %s435_s16, %s435_s16 }
  0x1d   :  { %p442_p0 = por %p441_p13, %p440_p12 }
  0x1f   :  { %p443_p1 = pnand %p442_p0, %p436_p11 }
  0x21   :  { %446 = shalt.err (!%p443_p1)
}
  0x22   :  { %42 = dma.hbm_to_vmem [thread:$0]  %s587_s4, 3072, %s37_s8, [#allocation6], %s476_s28, %s476_s28, %s477_s29  }
  0x23   :  { %469 = dma.done.wait [#allocation3], 384  }
  0x24   :  { %470 = vsyncadd [#allocation3], 4294966912 }
  0x25   :  { %471 = dma.done.wait [#allocation6], 3072  }
  0x26   :  { %472 = vsyncadd [#allocation6], 4294964224  ;;  %v49_v0 = vld [vmem:[%s583_s0] sm:$0xff]  ;;  %s479_s20 = smov 4   ;;  %s480_s21 = smov 12   ;;  %v92_v4 = vld [vmem:[#allocation2 + $0x8] sm:$0xff] }
  0x27   :  { %393 = vtanh.f32 %v49_v0  ;;  %s481_s22 = smov 16   ;;  %v91_v3 = vld [vmem:[#allocation2] sm:$0xff]  ;;  %v482_v5 = vmov 0.0|0.0   ;;  %vm483_vm0 = vmmov 0   ;;  %v484_v7 = vmov 0.0   ;;  %s485_s0 = smov 20  }
  0x28   :  { %339 = vmatprep.subr.bf16.mxu0 %v482_v5  ;;  %v340_v6 = vpack.c.bf16 %v92_v4, %v91_v3  ;;  %336 = vmatprep.mubr.msk.f32.mxu0 %vm483_vm0, %v484_v7  ;;  %v93_v8 = vld [vmem:[#allocation2 + $0x10] sm:$0xff]  ;;  %vm69_vm1 = vcmask 31744   ;;  %vm71_vm2 = vcmask 64512   ;;  %vm73_vm3 = vcmask 97280   ;;  %v323_v17 = vld [vmem:[%s584_s1] ss:$0 sm:$0xff] }
  0x29   :  { %342 = vmatprep.subr.bf16.mxu1 %v482_v5  ;;  %vm75_vm4 = vcmask 130048   ;;  %vm77_vm5 = vcmask 162816   ;;  %vm94_vm6 = vcmask 195584   ;;  %v209_v25 = vld [vmem:[#allocation5] sm:$0xff]  ;;  %v210_v26 = vld [vmem:[#allocation5 + $0x8] sm:$0xff]  ;;  %v211_v27 = vld [vmem:[#allocation5 + $0x10] sm:$0xff] }
  0x2a   :  { %341 = vmatpush3.bf16.msra.mxu0 %v340_v6  ;;  %v343_v28 = vpack.c.bf16 %v210_v26, %v209_v25  ;;  %v212_v29 = vld [vmem:[#allocation5 + $0x18] sm:$0xff]  ;;  %v213_v31 = vld [vmem:[#allocation5 + $0x20] sm:$0xff]  ;;  %v214_v32 = vld [vmem:[#allocation5 + $0x28] sm:$0xff]  ;;  %s486_s1 = smov 64   ;;  %s487_s24 = smov 32   ;;  %vm181_vm7 = vcmask 261120  }
  0x2b   :  { %334 = vmatprep.subr.mxu0 %v484_v7  ;;  %v346_v30 = vpack.c.bf16 %v212_v29, %v211_v27  ;;  %v349_v33 = vpack.c.bf16 %v214_v32, %v213_v31  ;;  %v215_v34 = vld [vmem:[#allocation5 + $0x30] sm:$0xff]  ;;  %v216_v35 = vld [vmem:[#allocation5 + $0x38] sm:$0xff]  ;;  %v217_v37 = vld [vmem:[#allocation5 + $0x40] sm:$0xff]  ;;  %s488_s25 = smov 96   ;;  %vm183_vm8 = vcmask 523264   ;;  %vm185_vm9 = vcmask 785408  }
  0x2c   :  { %344 = vmatpush1.bf16.msra.mxu1 %v343_v28  ;;  %v352_v36 = vpack.c.bf16 %v216_v35, %v215_v34  ;;  %v218_v38 = vld [vmem:[#allocation5 + $0x48] sm:$0xff]  ;;  %v219_v40 = vld [vmem:[#allocation5 + $0x50] sm:$0xff]  ;;  %v220_v41 = vld [vmem:[#allocation5 + $0x58] sm:$0xff] }
  0x2d   :  { %345 = vmatprep.subr.bf16.mxu1 %v482_v5  ;;  %v355_v39 = vpack.c.bf16 %v218_v38, %v217_v37  ;;  %v358_v42 = vpack.c.bf16 %v220_v41, %v219_v40  ;;  %v221_v43 = vld [vmem:[#allocation5 + $0x60] sm:$0xff]  ;;  %v222_v44 = vld [vmem:[#allocation5 + $0x68] sm:$0xff]  ;;  %v223_v48 = vld [vmem:[#allocation5 + $0x70] sm:$0xff] }
  0x2e   :  { %335 = vmatpush3.msra.mxu0 %v93_v8  ;;  %v361_v46 = vpack.c.bf16 %v222_v44, %v221_v43  ;;  %v224_v49 = vld [vmem:[#allocation5 + $0x78] sm:$0xff]  ;;  %v225_v51 = vld [vmem:[#allocation5 + $0x80] sm:$0xff]  ;;  %v226_v52 = vld [vmem:[#allocation5 + $0x88] sm:$0xff] }
  0x2f   :  { %v364_v50 = vpack.c.bf16 %v224_v49, %v223_v48  ;;  %v367_v53 = vpack.c.bf16 %v226_v52, %v225_v51  ;;  %v227_v54 = vld [vmem:[#allocation5 + $0x90] sm:$0xff]  ;;  %v228_v55 = vld [vmem:[#allocation5 + $0x98] sm:$0xff]  ;;  %v229_v59 = vld [vmem:[#allocation5 + $0xa0] sm:$0xff] }
  0x30   :  { %347 = vmatpush1.bf16.msra.mxu1 %v346_v30  ;;  %v370_v57 = vpack.c.bf16 %v228_v55, %v227_v54  ;;  %v230_v60 = vld [vmem:[#allocation5 + $0xa8] sm:$0xff]  ;;  %v231_v62 = vld [vmem:[#allocation5 + $0xb0] sm:$0xff]  ;;  %v232_v63 = vld [vmem:[#allocation5 + $0xb8] sm:$0xff] }
  0x31   :  { %v394_v1 = vpop.eup %393  ;;  %348 = vmatprep.subr.bf16.mxu1 %v482_v5  ;;  %v373_v61 = vpack.c.bf16 %v230_v60, %v229_v59  ;;  %v376_v0 = vpack.c.bf16 %v232_v63, %v231_v62  ;;  %v187_v4 = vld [vmem:[%s586_s3] sm:$0x3]  ;;  %s489_s3 = smov [#allocation7]  }
  0x32   :  { %v51_v2 = vmul.f32 3.535534, %v394_v1  ;;  %v189_v1 = vlaneseq  ;;  %s313_s28 = sshll.u32 %s489_s3, 4  ;;  %s314_s28 = int_to_ptr.vmem [resolvable:$true] %s313_s28 }
  0x33   :  { %p452_p3 = scmp.lt.s32.totalorder %s314_s28, %s314_s28 }
  0x34   :  { %54 = vrot.lane.b32.xlu0 %v51_v2, %s479_s20  ;;  %60 = vrot.lane.b32.xlu1 %v51_v2, %s480_s21 }
  0x35   :  { %350 = vmatpush1.bf16.msra.mxu1 %v349_v33 }
  0x36   :  { %351 = vmatprep.subr.bf16.mxu1 %v482_v5 }
  0x38   :  { %57 = vrot.lane.b32.xlu0 %v51_v2, %s477_s29  ;;  %63 = vrot.lane.b32.xlu1 %v51_v2, %s481_s22  ;;  %s447_s29 = scalar_lea.vmem %s314_s28, 128 }
  0x39   :  { %353 = vmatpush1.bf16.msra.mxu1 %v352_v36  ;;  %p448_p2 = scmp.ne.s32.totalorder %s314_s28, %s447_s29  ;;  %p453_p4 = scmp.lt.s32.totalorder %s447_s29, %s447_s29 }
  0x3a   :  { %354 = vmatprep.subr.bf16.mxu1 %v482_v5 }
  0x3b   :  { %p454_p5 = por %p453_p4, %p452_p3 }
  0x3c   :  { %66 = vrot.lane.b32.xlu0 %v51_v2, %s485_s0 }
  0x3d   :  { %356 = vmatpush1.bf16.msra.mxu1 %v355_v39  ;;  %p455_p6 = pnand %p454_p5, %p448_p2 }
  0x3e   :  { %357 = vmatprep.subr.bf16.mxu1 %v482_v5 }
  0x41   :  { %359 = vmatpush1.bf16.msra.mxu1 %v358_v42 }
  0x42   :  { %360 = vmatprep.subr.bf16.mxu1 %v482_v5 }
  0x45   :  { %362 = vmatpush1.bf16.msra.mxu1 %v361_v46 }
  0x46   :  { %363 = vmatprep.subr.bf16.mxu1 %v482_v5 }
  0x49   :  { %365 = vmatpush1.bf16.msra.mxu1 %v364_v50 }
  0x4a   :  { %366 = vmatprep.subr.bf16.mxu1 %v482_v5 }
  0x4d   :  { %368 = vmatpush1.bf16.msra.mxu1 %v367_v53 }
  0x4e   :  { %369 = vmatprep.subr.bf16.mxu1 %v482_v5 }
  0x51   :  { %371 = vmatpush1.bf16.msra.mxu1 %v370_v57 }
  0x52   :  { %372 = vmatprep.subr.bf16.mxu1 %v482_v5 }
  0x55   :  { %374 = vmatpush1.bf16.msra.mxu1 %v373_v61 }
  0x56   :  { %375 = vmatprep.subr.bf16.mxu1 %v482_v5 }
  0x59   :  { %377 = vmatpush1.bf16.msra.mxu1 %v376_v0 }
  0xa6   :  { %v55_v9 = vpop.permute.xlu0 %54  ;;  %v61_v10 = vpop.permute.xlu1 %60 }
  0xa7   :  { %v70_v11 = vsel %vm69_vm1, %v51_v2, %v55_v9  ;;  %v190_v2 = vshrl.u32 %v189_v1, 7 }
  0xa9   :  { %v195_v3 = vsub.s32 1, %v190_v2  ;;  %v191_v6 = vsub.s32 0, %v190_v2 }
  0xaa   :  { %v58_v12 = vpop.permute.xlu0 %57  ;;  %v64_v13 = vpop.permute.xlu1 %63 }
  0xab   :  { %v72_v14 = vsel %vm71_vm2, %v70_v11, %v58_v12  ;;  %v196_v7 = vrot.slane %v187_v4, %v195_v3  ;;  %v192_v11 = vrot.slane %v187_v4, %v191_v6 }
  0xac   :  { %v74_v15 = vsel %vm73_vm3, %v72_v14, %v61_v10 }
  0xad   :  { %v76_v16 = vsel %vm75_vm4, %v74_v15, %v64_v13 }
  0xae   :  { %v67_v18 = vpop.permute.xlu0 %66 }
  0xaf   :  { %v78_v19 = vsel %vm77_vm5, %v76_v16, %v67_v18 }
  0xb0   :  { %v86_v20 = vsub.f32 %v78_v19, %v323_v17 }
  0xb2   :  { %v87_v21 = vmul.f32 %v86_v20, %v86_v20 }
  0xb4   :  { %v88_v22 = vsub.f32 0.0, %v87_v21 }
  0xb6   :  { %v89_v23 = vmul.f32 1.442695, %v88_v22 }
  0xb8   :  { %395 = vpow2.f32 %v89_v23 }
  0xc2   :  { %v396_v24 = vpop.eup %395 }
  0xc3   :  { %337 = vmatmul.mubr.msk.f32.vlgmr.msra.gmra.mrb[0].mxu0 %vm94_vm6, %v396_v24 }
 0x196   :  { %v164_v45 = vpop.f32.mrb[0].mxu0 }
 0x197   :  { %397 = vtanh.f32 %v164_v45  ;;  %v338_v47 = vpop.f32.mrb[1].mxu0 }
 0x1a1   :  { %v398_v56 = vpop.eup %397 }
 0x1a2   :  { %v169_v58 = vmul.f32 3.535534, %v398_v56 }
 0x1a4   :  { %175 = vrot.lane.b32.xlu0 %v169_v58, %s486_s1  ;;  %172 = vrot.lane.b32.xlu1 %v169_v58, %s487_s24 }
 0x1a8   :  { %178 = vrot.lane.b32.xlu1 %v169_v58, %s488_s25 }
 0x216   :  { %v173_v8 = vpop.permute.xlu1 %172  ;;  %v176_v9 = vpop.permute.xlu0 %175 }
 0x217   :  { %v182_v10 = vsel %vm181_vm7, %v169_v58, %v173_v8 }
 0x218   :  { %v200_v12 = vsub.f32 %v182_v10, %v196_v7  ;;  %v184_v14 = vsel %vm183_vm8, %v182_v10, %v176_v9 }
 0x21a   :  { %v202_v5 = vmul.f32 %v200_v12, %v200_v12  ;;  %v179_v13 = vpop.permute.xlu1 %178 }
 0x21b   :  { %v186_v15 = vsel %vm185_vm9, %v184_v14, %v179_v13 }
 0x21c   :  { %v204_v16 = vsub.f32 0.0, %v202_v5  ;;  %v199_v17 = vsub.f32 %v186_v15, %v192_v11 }
 0x21e   :  { %v207_v18 = vmul.f32 1.442695, %v204_v16  ;;  %v201_v19 = vmul.f32 %v199_v17, %v199_v17 }
 0x220   :  { %399 = vpow2.f32 %v207_v18  ;;  %v203_v20 = vsub.f32 0.0, %v201_v19 }
 0x222   :  { %v205_v21 = vmul.f32 1.442695, %v203_v20 }
 0x224   :  { %401 = vpow2.f32 %v205_v21 }
 0x22a   :  { %v400_v22 = vpop.eup %399 }
 0x22b   :  { %325 = vmatprep.mubr.msk.f32.mxu1 %vm183_vm8, %v400_v22 }
 0x22e   :  { %v402_v23 = vpop.eup %401 }
 0x22f   :  { %301 = vmatmul.mubr.f32.vlgmr.msra.gmra.mrb[0].mxu1 %v402_v23 }
 0x302   :  { %v302_v24 = vpop.f32.mrb[0].mxu1 }
 0x303   :  { %306 = vst [vmem:[#allocation7] sm:$0xff] %v302_v24  ;;  %v304_v25 = vpop.f32.mrb[1].mxu1 }
 0x304   :  { %458 = shalt.err (!%p455_p6)
}
 0x305   :  { %s459_s7 = scalar_lea.hbm %s588_s5, 128 }
 0x306   :  { %p460_p7 = scmp.ne.s32.totalorder %s588_s5, %s459_s7  ;;  %p463_p8 = scmp.lt.u32.totalorder %s459_s7, %s588_s5 }
 0x308   :  { %p465_p9 = pnand %p463_p8, %p460_p7 }
 0x30a   :  { %468 = shalt.err (!%p465_p9)
}
 0x30b   :  { %316 = dma.vmem_to_hbm [thread:$0]  %s314_s28, 128, %s588_s5, [#allocation4]  }
 0x30c   :  { %473 = dma.done.wait [#allocation4], 128  }
 0x30d   :  { %474 = vsyncadd [#allocation4], 4294967168 }
 0x30e   :  { %320 = vsyncpa [#allocation3], 1 }
 0x30f   :  { %321 = vsyncpa [#allocation6], 1 }
 0x310   :  { %322 = vsyncpa [#allocation4], 1 }

</bundles_post_ra>
